<compile_context>
chip_gen: v5e
topology: v5e:2x2
jax: 0.10.0
libtpu: 0.0.40
codegen_flags: <defaults>
</compile_context>

<pallas_src>
import functools

import jax
import jax.numpy as jnp
from jax.experimental import pallas as pl
from jax.experimental.pallas import tpu as pltpu

IN_FEATURES = 4
HIDDEN1 = 30
HIDDEN2 = 20
OUT_FEATURES = 2
LANE = 128  # TPU lane width; batch tiles must be a multiple of this.


def _round_up(n, m):
    return ((n + m - 1) // m) * m


def _cdiv(a, b):
    return (a + b - 1) // b


def _mlp_kernel(x_ref, w1_ref, b1_ref, w2_ref, b2_ref, w3_ref, b3_ref, o_ref):
    """One batch tile: x (4, TB) -> o (2, TB), batch on the lane axis.

    Weights are PyTorch-orientation (out, in) in the compute dtype (bf16 by
    default -> single-pass MXU); biases are f32 columns (out, 1).  All matmuls
    accumulate in f32 via preferred_element_type.
    """
    w_dt = w1_ref.dtype
    x = x_ref[...]                                                   # (4, TB)
    h1 = jnp.dot(w1_ref[...], x,
                 preferred_element_type=jnp.float32) + b1_ref[...]   # (30, TB) f32
    h1 = jnp.maximum(h1, 0.0)                                        # ReLU
    h2 = jnp.dot(w2_ref[...], h1.astype(w_dt),
                 preferred_element_type=jnp.float32) + b2_ref[...]   # (20, TB) f32
    h2 = jnp.maximum(h2, 0.0)                                        # ReLU
    o = jnp.dot(w3_ref[...], h2.astype(w_dt),
                preferred_element_type=jnp.float32) + b3_ref[...]    # (2, TB) f32
    o_ref[...] = o.astype(o_ref.dtype)


def cartpole_actor_forward_fm(x_fm, params, *, max_tile_b=32768,
                              min_grid_steps=2, use_bf16=True,
                              vmem_limit_bytes=32 * 1024 * 1024):
    """Feature-major forward.  x_fm: (4, B) float.  Returns (2, B) f32 logits.

    params: PyTorch-orientation weights (out, in) and column biases (out, 1).
    """
    B = x_fm.shape[1]
    compute_dtype = jnp.bfloat16 if use_bf16 else jnp.float32

    w1 = params["w1"].astype(compute_dtype)
    w2 = params["w2"].astype(compute_dtype)
    w3 = params["w3"].astype(compute_dtype)
    b1 = params["b1"].astype(jnp.float32)
    b2 = params["b2"].astype(jnp.float32)
    b3 = params["b3"].astype(jnp.float32)

    # ---- tile sizing: derive the tile from the number of grid steps --------
    # max_tile_b columns (~350 B live VMEM per column => ~12 MiB at 32K) fits
    # the scoped-VMEM budget on every generation, including v7x's 64 MiB/TC.
    # min_grid_steps=2 guarantees >=2 grid steps for batches > 128 so the
    # "parallel" axis can be split across v7x's two TensorCores.
    padded_min = _round_up(max(B, 1), LANE)
    nsteps = _cdiv(padded_min, _round_up(max_tile_b, LANE))
    if padded_min >= min_grid_steps * LANE:
        nsteps = max(nsteps, min_grid_steps)
    tb = _round_up(_cdiv(max(B, 1), nsteps), LANE)
    padded_b = tb * nsteps

    x_t = x_fm.astype(compute_dtype)                                 # (4, B)
    if padded_b != B:
        x_t = jnp.pad(x_t, ((0, 0), (0, padded_b - B)))              # (4, padded_b)

    def resident(shape):
        # Tiny weight/bias block: same block index every grid step -> stays
        # resident in VMEM across the whole grid (loaded once).
        return pl.BlockSpec(shape, lambda i: (0, 0))

    out_fm = pl.pallas_call(
        _mlp_kernel,
        out_shape=jax.ShapeDtypeStruct((OUT_FEATURES, padded_b), jnp.float32),
        grid=(nsteps,),
        in_specs=[
            pl.BlockSpec((IN_FEATURES, tb), lambda i: (0, i)),       # x tile
            resident(w1.shape), resident(b1.shape),
            resident(w2.shape), resident(b2.shape),
            resident(w3.shape), resident(b3.shape),
        ],
        out_specs=pl.BlockSpec((OUT_FEATURES, tb), lambda i: (0, i)),
        compiler_params=pltpu.CompilerParams(
            # "parallel": lets v7x shard the batch-tile axis across its two
            # TensorCores (harmless no-op on single-TC v5e/v6e).
            dimension_semantics=("parallel",),
            # Raise v5e's 16 MiB default; equals the v6e/v7x default, well
            # within physical VMEM everywhere.
            vmem_limit_bytes=vmem_limit_bytes,
        ),
    )(x_t, w1, b1, w2, b2, w3, b3)

    if padded_b != B:
        out_fm = out_fm[:, :B]
    return out_fm                                                    # (2, B)


def cartpole_actor_forward(x, params, **kw):
    """Batch-major convenience wrapper: x (B, 4) -> (B, 2) f32 logits.

    Jit the call so the transposes fuse into the surrounding program instead
    of adding extra HBM round-trips; prefer the feature-major entry point
    (cartpole_actor_forward_fm) when the caller can keep activations (4, B).
    """
    return cartpole_actor_forward_fm(x.T, params, **kw).T


def init_params(key):
    """Deterministic init matching the PyTorch module:
    weights ~ N(0, 0.03) in (out, in) orientation, biases = 0.1 as (out, 1)."""
    k1, k2, k3 = jax.random.split(key, 3)
    std = 0.03
    w1 = jax.random.normal(k1, (HIDDEN1, IN_FEATURES), jnp.float32) * std
    w2 = jax.random.normal(k2, (HIDDEN2, HIDDEN1), jnp.float32) * std
    w3 = jax.random.normal(k3, (OUT_FEATURES, HIDDEN2), jnp.float32) * std
    b1 = jnp.full((HIDDEN1, 1), 0.1, jnp.float32)
    b2 = jnp.full((HIDDEN2, 1), 0.1, jnp.float32)
    b3 = jnp.full((OUT_FEATURES, 1), 0.1, jnp.float32)
    return {"w1": w1, "b1": b1, "w2": w2, "b2": b2, "w3": w3, "b3": b3}


def reference_forward(x, params):
    # Same math as the PyTorch module: y = x @ W.T + b (f32 throughout).
    h1 = jnp.maximum(x @ params["w1"].T + params["b1"].T, 0.0)
    h2 = jnp.maximum(h1 @ params["w2"].T + params["b2"].T, 0.0)
    return h2 @ params["w3"].T + params["b3"].T


if __name__ == "__main__":
    key = jax.random.PRNGKey(0)
    pkey, xkey1, xkey2 = jax.random.split(key, 3)
    params = init_params(pkey)

    fwd_bf16 = jax.jit(cartpole_actor_forward)                          # default: bf16 matmuls
    fwd_f32 = jax.jit(functools.partial(cartpole_actor_forward, use_bf16=False))

    # Small batch (single 128-lane tile), default bf16 path.
    batch = 8
    x_small = jax.random.normal(xkey1, (batch, IN_FEATURES), jnp.float32)
    out_small = jax.block_until_ready(fwd_bf16(x_small, params))
    ref_small = reference_forward(x_small, params)
    assert out_small.shape == (batch, OUT_FEATURES)
    assert jnp.allclose(out_small, ref_small, atol=1e-2, rtol=2e-2), (
        float(jnp.max(jnp.abs(out_small - ref_small))))

    # Non-multiple-of-128 batch exercising the multi-step grid (>=2 steps for
    # the v7x two-core split) plus the tail-padding path, bf16 path.
    batch2 = 300
    x_big = jax.random.normal(xkey2, (batch2, IN_FEATURES), jnp.float32)
    out_big = jax.block_until_ready(fwd_bf16(x_big, params))
    ref_big = reference_forward(x_big, params)
    assert out_big.shape == (batch2, OUT_FEATURES)
    assert jnp.allclose(out_big, ref_big, atol=1e-2, rtol=2e-2), (
        float(jnp.max(jnp.abs(out_big - ref_big))))

    # f32 path for tight parity with the f32 reference.
    out_big_f32 = jax.block_until_ready(fwd_f32(x_big, params))
    assert out_big_f32.shape == (batch2, OUT_FEATURES)
    assert jnp.allclose(out_big_f32, ref_big, atol=1e-5, rtol=1e-5), (
        float(jnp.max(jnp.abs(out_big_f32 - ref_big))))

    print("KERNEL_OK")
</pallas_src>

<mosaic_0001>
module attributes {stable_mosaic.version = 11 : i64} {
  func.func @_mlp_kernel(%arg0: i32, %arg1: memref<4x128xbf16, #tpu.memory_space<vmem>>, %arg2: memref<30x4xbf16, #tpu.memory_space<vmem>>, %arg3: memref<30x1xf32, #tpu.memory_space<vmem>>, %arg4: memref<20x30xbf16, #tpu.memory_space<vmem>>, %arg5: memref<20x1xf32, #tpu.memory_space<vmem>>, %arg6: memref<2x20xbf16, #tpu.memory_space<vmem>>, %arg7: memref<2x1xf32, #tpu.memory_space<vmem>>, %arg8: memref<2x128xf32, #tpu.memory_space<vmem>>) attributes {dimension_semantics = [#tpu.dimension_semantics<parallel>], iteration_bounds = array<i64: 1>, scalar_prefetch = 0 : i64, scratch_operands = 0 : i64, tpu.core_type = #tpu.core_type<tc>, window_params = [{transform_indices = @transform_0, window_bounds = array<i64: 4, 128>}, {pipeline_mode = #tpu.pipeline_mode<synchronous>, transform_indices = @transform_1, window_bounds = array<i64: 30, 4>}, {pipeline_mode = #tpu.pipeline_mode<synchronous>, transform_indices = @transform_2, window_bounds = array<i64: 30, 1>}, {pipeline_mode = #tpu.pipeline_mode<synchronous>, transform_indices = @transform_3, window_bounds = array<i64: 20, 30>}, {pipeline_mode = #tpu.pipeline_mode<synchronous>, transform_indices = @transform_4, window_bounds = array<i64: 20, 1>}, {pipeline_mode = #tpu.pipeline_mode<synchronous>, transform_indices = @transform_5, window_bounds = array<i64: 2, 20>}, {pipeline_mode = #tpu.pipeline_mode<synchronous>, transform_indices = @transform_6, window_bounds = array<i64: 2, 1>}, {transform_indices = @transform_7, window_bounds = array<i64: 2, 128>}]} {
    %c0 = arith.constant 0 : index
    %c0_0 = arith.constant 0 : index
    %0 = vector.load %arg1[%c0, %c0_0] : memref<4x128xbf16, #tpu.memory_space<vmem>>, vector<4x128xbf16>
    %c0_1 = arith.constant 0 : index
    %c0_2 = arith.constant 0 : index
    %1 = vector.load %arg2[%c0_1, %c0_2] : memref<30x4xbf16, #tpu.memory_space<vmem>>, vector<30x4xbf16>
    %cst = arith.constant dense<0.000000e+00> : vector<30x128xf32>
    %2 = tpu.matmul %1, %0, %cst {dimension_numbers = #tpu.dot_dimension_numbers<[1], [0], [0], [1], [0, 0, 1, 1], [], []>} : vector<30x4xbf16>, vector<4x128xbf16>, vector<30x128xf32> -> vector<30x128xf32>
    %c0_3 = arith.constant 0 : index
    %c0_4 = arith.constant 0 : index
    %3 = vector.load %arg3[%c0_3, %c0_4] : memref<30x1xf32, #tpu.memory_space<vmem>>, vector<30x1xf32>
    %4 = vector.broadcast %3 : vector<30x1xf32> to vector<30x128xf32>
    %5 = arith.addf %2, %4 : vector<30x128xf32>
    %cst_5 = arith.constant 0.000000e+00 : f32
    %6 = vector.broadcast %cst_5 : f32 to vector<30x128xf32>
    %7 = arith.maximumf %5, %6 : vector<30x128xf32>
    %c0_6 = arith.constant 0 : index
    %c0_7 = arith.constant 0 : index
    %8 = vector.load %arg4[%c0_6, %c0_7] : memref<20x30xbf16, #tpu.memory_space<vmem>>, vector<20x30xbf16>
    %9 = arith.truncf %7 : vector<30x128xf32> to vector<30x128xbf16>
    %cst_8 = arith.constant dense<0.000000e+00> : vector<20x128xf32>
    %10 = tpu.matmul %8, %9, %cst_8 {dimension_numbers = #tpu.dot_dimension_numbers<[1], [0], [0], [1], [0, 0, 1, 1], [], []>} : vector<20x30xbf16>, vector<30x128xbf16>, vector<20x128xf32> -> vector<20x128xf32>
    %c0_9 = arith.constant 0 : index
    %c0_10 = arith.constant 0 : index
    %11 = vector.load %arg5[%c0_9, %c0_10] : memref<20x1xf32, #tpu.memory_space<vmem>>, vector<20x1xf32>
    %12 = vector.broadcast %11 : vector<20x1xf32> to vector<20x128xf32>
    %13 = arith.addf %10, %12 : vector<20x128xf32>
    %cst_11 = arith.constant 0.000000e+00 : f32
    %14 = vector.broadcast %cst_11 : f32 to vector<20x128xf32>
    %15 = arith.maximumf %13, %14 : vector<20x128xf32>
    %c0_12 = arith.constant 0 : index
    %c0_13 = arith.constant 0 : index
    %16 = vector.load %arg6[%c0_12, %c0_13] : memref<2x20xbf16, #tpu.memory_space<vmem>>, vector<2x20xbf16>
    %17 = arith.truncf %15 : vector<20x128xf32> to vector<20x128xbf16>
    %cst_14 = arith.constant dense<0.000000e+00> : vector<2x128xf32>
    %18 = tpu.matmul %16, %17, %cst_14 {dimension_numbers = #tpu.dot_dimension_numbers<[1], [0], [0], [1], [0, 0, 1, 1], [], []>} : vector<2x20xbf16>, vector<20x128xbf16>, vector<2x128xf32> -> vector<2x128xf32>
    %c0_15 = arith.constant 0 : index
    %c0_16 = arith.constant 0 : index
    %19 = vector.load %arg7[%c0_15, %c0_16] : memref<2x1xf32, #tpu.memory_space<vmem>>, vector<2x1xf32>
    %20 = vector.broadcast %19 : vector<2x1xf32> to vector<2x128xf32>
    %21 = arith.addf %18, %20 : vector<2x128xf32>
    %c0_17 = arith.constant 0 : index
    %c0_18 = arith.constant 0 : index
    %22 = vector.load %arg8[%c0_17, %c0_18] : memref<2x128xf32, #tpu.memory_space<vmem>>, vector<2x128xf32>
    tpu.vector_store %arg8[%c0_17, %c0_18], %21 {strides = array<i32>} : memref<2x128xf32, #tpu.memory_space<vmem>>, vector<2x128xf32>,
    return
  }
  func.func @transform_0(%arg0: i32) -> (i32, i32) {
    %c0_i32 = arith.constant 0 : i32
    %c0_i32_0 = arith.constant 0 : i32
    return %c0_i32, %arg0 : i32, i32
  }
  func.func @transform_1(%arg0: i32) -> (i32, i32) {
    %c0_i32 = arith.constant 0 : i32
    %c0_i32_0 = arith.constant 0 : i32
    %c0_i32_1 = arith.constant 0 : i32
    return %c0_i32, %c0_i32_0 : i32, i32
  }
  func.func @transform_2(%arg0: i32) -> (i32, i32) {
    %c0_i32 = arith.constant 0 : i32
    %c0_i32_0 = arith.constant 0 : i32
    %c0_i32_1 = arith.constant 0 : i32
    return %c0_i32, %c0_i32_0 : i32, i32
  }
  func.func @transform_3(%arg0: i32) -> (i32, i32) {
    %c0_i32 = arith.constant 0 : i32
    %c0_i32_0 = arith.constant 0 : i32
    %c0_i32_1 = arith.constant 0 : i32
    return %c0_i32, %c0_i32_0 : i32, i32
  }
  func.func @transform_4(%arg0: i32) -> (i32, i32) {
    %c0_i32 = arith.constant 0 : i32
    %c0_i32_0 = arith.constant 0 : i32
    %c0_i32_1 = arith.constant 0 : i32
    return %c0_i32, %c0_i32_0 : i32, i32
  }
  func.func @transform_5(%arg0: i32) -> (i32, i32) {
    %c0_i32 = arith.constant 0 : i32
    %c0_i32_0 = arith.constant 0 : i32
    %c0_i32_1 = arith.constant 0 : i32
    return %c0_i32, %c0_i32_0 : i32, i32
  }
  func.func @transform_6(%arg0: i32) -> (i32, i32) {
    %c0_i32 = arith.constant 0 : i32
    %c0_i32_0 = arith.constant 0 : i32
    %c0_i32_1 = arith.constant 0 : i32
    return %c0_i32, %c0_i32_0 : i32, i32
  }
  func.func @transform_7(%arg0: i32) -> (i32, i32) {
    %c0_i32 = arith.constant 0 : i32
    %c0_i32_0 = arith.constant 0 : i32
    return %c0_i32, %arg0 : i32, i32
  }
}

</mosaic_0001>

<bundles_post_ra>
// kernel: cartpole_actor_forward.1
= control target key start
LH: loop header
LB: loop body
LE: loop exit
PB: predicated region body
PF: predicated region fallthrough
CT: control target
= control target key end

     0   :  { %vm73_vm0 = vcmask 1041408   ;;  %v223_v1 = vmov 0   ;;  %vm66_vm1 = vcmask 31744   ;;  %vm138_vm2 = vcmask 1046528   ;;  %s316_s0 = inlined_call_operand.vmem [shape: bf16[4,128], index: 0, kind: input, shape index: {}]   ;;  %s317_s1 = inlined_call_operand.vmem [shape: bf16[30,4], index: 1, kind: input, shape index: {}]   ;;  %s318_s2 = inlined_call_operand.vmem [shape: f32[30,1], index: 2, kind: input, shape index: {}]   ;;  %s319_s4 = inlined_call_operand.vmem [shape: f32[20,1], index: 4, kind: input, shape index: {}]   ;;  %s320_s6 = inlined_call_operand.vmem [shape: f32[2,1], index: 6, kind: input, shape index: {}]   ;;  %s321_s3 = inlined_call_operand.vmem [shape: bf16[20,30], index: 3, kind: input, shape index: {}]   ;;  %s322_s5 = inlined_call_operand.vmem [shape: bf16[2,20], index: 5, kind: input, shape index: {}]   ;;  %s323_s7 = inlined_call_operand.vmem [shape: f32[2,128], index: 7, kind: output, shape index: {}]  }
   0x1   :  { %v27_v0 = vld [vmem:[%s316_s0] sm:$0x3]  ;;  %221 = vset.pattern.permute.xlu1 %v223_v1  ;;  %220 = vset.pattern.permute.xlu0 %v223_v1  ;;  %v34_v2 = vld [vmem:[%s318_s2 + $0x10] sm:$0xff]  ;;  %v35_v6 = vld [vmem:[%s318_s2 + $0x18] sm:$0x3f]  ;;  %vm131_vm3 = vcmask 244736  }
   0x2   :  { %v75_v3 = vsel %vm73_vm0, %v27_v0, 0  ;;  %v214_v4 = vld [vmem:[%s317_s1] sm:$0xff]  ;;  %48 = vperm.xlu0 %220, %v34_v2   ;;  %222 = vset.pattern.permute.xlu2 %v223_v1  ;;  %v33_v7 = vld [vmem:[%s318_s2 + $0x8] sm:$0xff]  ;;  %v107_v14 = vld [vmem:[%s319_s4 + $0x10] sm:$0xf]  ;;  %vm172_vm4 = vcmask 162816  }
   0x3   :  { %v32_v5 = vld [vmem:[%s318_s2] sm:$0xff]  ;;  %84 = vmatpush.bf16.msra.mxu0 %v75_v3  ;;  %v203_v8 = vld [vmem:[%s317_s1 + $0x8] sm:$0xf]  ;;  %v215_v9 = vld [vmem:[%s317_s1 + $0x8] sm:$0x70]  ;;  %120 = vperm.xlu2 %222, %v107_v14  }
   0x4   :  { %38 = vperm.xlu1 %221, %v32_v5   ;;  %v106_v10 = vld [vmem:[%s319_s4 + $0x8] sm:$0xff]  ;;  %v166_v11 = vld [vmem:[%s320_s6] sm:$0x3]  ;;  %v204_v12 = vor.u32 %v215_v9, %v203_v8 }
   0x5   :  { %v105_v17 = vld [vmem:[%s319_s4] sm:$0xff]  ;;  %v102_v29 = vld [vmem:[%s321_s3 + $0x8] sm:$0x3] }
   0x6   :  { %205 = vmatmul.msk.bf16.vlgmr.msra.gmra.mxu0 %vm66_vm1, %v214_v4  ;;  %v128_v33 = vunpack.c.l.b16 %v102_v29  ;;  %v216_v36 = vld [vmem:[%s321_s3] sm:$0xff] }
   0x7   :  { %v163_v54 = vld [vmem:[%s322_s5] sm:$0x1] }
   0x8   :  { %v130_v37 = vpack.c.b16 %v128_v33, %v128_v33 }
   0xa   :  { %53 = vperm.xlu0 %220, %v35_v6  }
   0xb   :  { %110 = vperm.xlu2 %222, %v105_v17  }
   0xc   :  { %43 = vperm.xlu1 %221, %v33_v7  }
  0x12   :  { %115 = vperm.xlu0 %220, %v106_v10  }
  0x14   :  { %169 = vperm.xlu1 %221, %v166_v11  }
  0x16   :  { %206 = vmatmul.msk.bf16.gmra.mxu0 %vm66_vm1, %v204_v12 }
  0x5d   :  { %v121_v38 = vpop.permute.xlu2 %120 }
  0x65   :  { %v111_v41 = vpop.permute.xlu2 %110 }
  0x74   :  { %v49_v18 = vpop.permute.xlu0 %48 }
  0x76   :  { %v39_v16 = vpop.permute.xlu1 %38 }
  0x7c   :  { %v54_v22 = vpop.permute.xlu0 %53 }
  0x7e   :  { %v44_v20 = vpop.permute.xlu1 %43 }
  0x83   :  { %v86_v13 = vpop.f32.mrf.mxu0 }
  0x84   :  { %v87_v28 = vadd.f32 %v86_v13, %v39_v16  ;;  %v116_v43 = vpop.permute.xlu0 %115 }
  0x86   :  { %v96_v34 = vmax.f32 %v87_v28, 0.0  ;;  %v170_v55 = vpop.permute.xlu1 %169 }
  0x8b   :  { %v88_v15 = vpop.f32.mrf.mxu0 }
  0x8c   :  { %v89_v25 = vadd.f32 %v88_v15, %v44_v20 }
  0x8e   :  { %v97_v31 = vmax.f32 %v89_v25, 0.0 }
  0x90   :  { %v103_v35 = vpack.c.bf16 %v97_v31, %v96_v34 }
  0x93   :  { %v91_v19 = vpop.f32.mrf.mxu0 }
  0x94   :  { %v92_v21 = vadd.f32 %v91_v19, %v49_v18 }
  0x96   :  { %v98_v26 = vmax.f32 %v92_v21, 0.0 }
  0x9b   :  { %v93_v23 = vpop.f32.mrf.mxu0 }
  0x9c   :  { %v94_v24 = vadd.f32 %v93_v23, %v54_v22 }
  0x9e   :  { %v99_v27 = vmax.f32 %v94_v24, 0.0 }
  0xa0   :  { %v104_v30 = vpack.c.bf16 %v99_v27, %v98_v26 }
  0xa2   :  { %v140_v32 = vsel %vm138_vm2, %v104_v30, 0 }
  0xa3   :  { %148 = vmatpush.bf16.msra.mxu1 %v140_v32  ;;  %217 = vmatpush.bf16.msra.mxu3 %v140_v32 }
  0xa7   :  { %149 = vmatpush.bf16.msra.mxu1 %v103_v35  ;;  %218 = vmatpush.bf16.msra.mxu3 %v103_v35 }
  0xaa   :  { %211 = vmatmul.msk.bf16.vlgmr.msra.gmra.mxu1 %vm131_vm3, %v216_v36  ;;  %212 = vmatmul.msk.bf16.vlgmr.msra.gmra.mxu3 %vm131_vm3, %v130_v37 }
 0x127   :  { %v151_v39 = vpop.f32.mrf.mxu1 }
 0x128   :  { %v152_v47 = vadd.f32 %v151_v39, %v111_v41 }
 0x12a   :  { %v160_v51 = vmax.f32 %v152_v47, 0.0 }
 0x12d   :  { %v156_v40 = vpop.f32.mrf.mxu3 }
 0x12e   :  { %v157_v42 = vadd.f32 %v156_v40, %v121_v38 }
 0x12f   :  { %v153_v44 = vpop.f32.mrf.mxu1 }
 0x130   :  { %v162_v45 = vmax.f32 %v157_v42, 0.0  ;;  %v154_v46 = vadd.f32 %v153_v44, %v116_v43 }
 0x132   :  { %v165_v48 = vpack.c.bf16 %v162_v45, %v162_v45  ;;  %v161_v49 = vmax.f32 %v154_v46, 0.0 }
 0x134   :  { %v177_v50 = vsel %vm73_vm0, %v165_v48, 0  ;;  %v164_v53 = vpack.c.bf16 %v161_v49, %v160_v51 }
 0x135   :  { %v158_v52 = vpop.f32.mrf.mxu3  ;;  %185 = vmatpush.bf16.msra.mxu2 %v177_v50 }
 0x139   :  { %186 = vmatpush.bf16.msra.mxu2 %v164_v53 }
 0x13c   :  { %213 = vmatmul.msk.bf16.vlgmr.msra.gmra.mxu2 %vm172_vm4, %v163_v54 }
 0x1bf   :  { %v188_v56 = vpop.f32.mrf.mxu2 }
 0x1c0   :  { %v189_v57 = vadd.f32 %v188_v56, %v170_v55 }
 0x1c2   :  { %192 = vst [vmem:[%s323_s7] sm:$0x3] %v189_v57 }
 0x1c7   :  { %v190_v58 = vpop.f32.mrf.mxu2 }

</bundles_post_ra>
